<compile_context>
chip_gen: v6e
topology: v6e:2x2x1
jax: 0.10.0
libtpu: 0.0.40
codegen_flags: <defaults>
</compile_context>

<pallas_src>
import jax
import jax.numpy as jnp
from jax import lax
from jax.experimental import pallas as pl
from jax.experimental.pallas import tpu as pltpu


def _round_up(a, m):
    return (a + m - 1) // m * m


def _layernorm_mlp(v, gamma_ref, beta_ref, w1m_ref, b1m_ref, w2m_ref, b2m_ref,
                   out_ref):
    """Shared tail: LayerNorm(E, eps=1e-6) -> Linear -> ReLU -> Linear, all f32."""
    mean = jnp.mean(v, axis=-1, keepdims=True)
    var = jnp.mean(jnp.square(v - mean), axis=-1, keepdims=True)
    v = (v - mean) * lax.rsqrt(var + 1e-6)
    v = v * gamma_ref[...] + beta_ref[...]                      # (1, E) broadcasts
    # dropout: identity (inference)
    h = jnp.dot(v, w1m_ref[...], preferred_element_type=jnp.float32)   # (tb, E//2)
    h = jnp.maximum(h + b1m_ref[...], 0.0)
    logits = jnp.dot(h, w2m_ref[...], preferred_element_type=jnp.float32)  # (tb, Cp)
    out_ref[...] = logits + b2m_ref[...]                        # lane-dense store


def cls_head_folded_kernel(x_ref, w1r_ref, b1r_ref, w2r_ref, b2r_ref,
                           gamma_ref, beta_ref, w1m_ref, b1m_ref, w2m_ref,
                           b2m_ref, out_ref):
    """Reductor stage 1 as a single MXU matmul (batch folded onto lanes).

    x block: (P, tb*E) with column index = b*E + e (batch-major). Requires
    E % 128 == 0 so the (1, tb*E) -> (tb, E) regroup is layout-clean.
    """
    E = w1m_ref.shape[0]
    tb = x_ref.shape[1] // E

    xf = x_ref[...].astype(jnp.float32)                         # bf16 -> f32 in-reg
    h1 = jnp.dot(w1r_ref[...], xf, preferred_element_type=jnp.float32)  # (P//2, tb*E)
    h1 = jnp.maximum(h1 + b1r_ref[...], 0.0)
    # stage 2: VPU broadcast-mul + sublane reduce (keeps the MXU free)
    r = jnp.sum(h1 * w2r_ref[...], axis=0, keepdims=True)       # (1, tb*E)
    v = r.reshape(tb, E) + b2r_ref[0, 0]                        # (tb, E)

    _layernorm_mlp(v, gamma_ref, beta_ref, w1m_ref, b1m_ref, w2m_ref, b2m_ref,
                   out_ref)


def cls_head_loop_kernel(x_ref, w1r_ref, b1r_ref, w2r_ref, b2r_ref,
                         gamma_ref, beta_ref, w1m_ref, b1m_ref, w2m_ref,
                         b2m_ref, out_ref):
    """Fallback reductor for E % 128 != 0 (e.g. the toy E=32 test shapes).

    lax.fori_loop over the batch tile: one canonical (P//2, P) x (P, E) MXU
    matmul per sample; rows are placed into the (tb, E) carry with a one-hot
    select (no Python unroll, no concatenate, no dynamic stores).
    """
    tb, _, E = x_ref.shape
    w1r = w1r_ref[...]                                          # (P//2, P)
    b1r = b1r_ref[...]                                          # (P//2, 1)
    w2r = w2r_ref[...]                                          # (P//2, 1)
    row_ids = lax.broadcasted_iota(jnp.int32, (tb, 1), 0)

    def body(b, acc):
        xb = x_ref[b].astype(jnp.float32)                       # (P, E), dynamic lead idx
        h1 = jnp.dot(w1r, xb, preferred_element_type=jnp.float32)   # (P//2, E)
        h1 = jnp.maximum(h1 + b1r, 0.0)
        row = jnp.sum(h1 * w2r, axis=0, keepdims=True)          # (1, E)
        return jnp.where(row_ids == b, row, acc)                # land row b

    v = lax.fori_loop(0, tb, body, jnp.zeros((tb, E), jnp.float32))
    v = v + b2r_ref[0, 0]

    _layernorm_mlp(v, gamma_ref, beta_ref, w1m_ref, b1m_ref, w2m_ref, b2m_ref,
                   out_ref)


def init_params(key, P, E, C):
    ks = jax.random.split(key, 8)
    s = 0.05
    n = lambda k, shape: jax.random.normal(k, shape, jnp.float32) * s
    return {
        # torch nn.Linear layout: weight (out, in), bias (out,)
        "w1r": n(ks[0], (P // 2, P)),
        "b1r": n(ks[1], (P // 2,)),
        "w2r": n(ks[2], (1, P // 2)),
        "b2r": n(ks[3], (1,)),
        "gamma": jnp.ones((E,), jnp.float32),
        "beta": jnp.zeros((E,), jnp.float32),
        "w1m": n(ks[4], (E // 2, E)),
        "b1m": n(ks[5], (E // 2,)),
        "w2m": n(ks[6], (C, E // 2)),
        "b2m": n(ks[7], (C,)),
    }


def cls_head_forward(x, p, *, tb=128, lane=128, x_dtype=jnp.bfloat16,
                     x_tile_budget_bytes=8 * 1024 * 1024):
    B, P, E = x.shape
    H = P // 2
    C = p["w2m"].shape[0]
    Cp = _round_up(C, lane)          # lane-dense logits slab, sliced back below

    # ---- batch-tile selection -----------------------------------------------
    # * multiple of 8 (sublane granularity of the (tb, E) intermediates)
    # * capped so the double-buffered x tile respects a per-buffer VMEM budget
    #   (v7x: 64 MiB physical / 32 MiB scoped default)
    # * once B is large enough, keep >= 2 grid steps so the "parallel" axis can
    #   shard across v7x's two TensorCores
    itemsize = jnp.dtype(x_dtype).itemsize
    vmem_cap = max(8, (x_tile_budget_bytes // (P * E * itemsize)) // 8 * 8)
    tb = min(tb, vmem_cap, max(8, _round_up(pl.cdiv(B, 2), 8)))
    tb = max(8, tb // 8 * 8)
    Bp = _round_up(B, tb)
    grid = (Bp // tb,)

    # ---- one-time wrapper-side layout plumbing (canonical MXU orientation) ---
    w1r = p["w1r"]                                        # (P//2, P)
    b1r = p["b1r"].reshape(H, 1)                          # column bias
    w2r = p["w2r"].reshape(H, 1)                          # stage-2 weights, column
    b2r = p["b2r"].reshape(1, 1).astype(jnp.float32)      # true scalar -> SMEM
    gamma = p["gamma"].reshape(1, E)
    beta = p["beta"].reshape(1, E)
    w1m_t = p["w1m"].T                                    # (E, E//2)
    b1m = p["b1m"].reshape(1, E // 2)
    w2m_t = jnp.pad(p["w2m"].T, ((0, 0), (0, Cp - C)))    # (E//2, Cp)
    b2m = jnp.pad(p["b2m"].reshape(1, C), ((0, 0), (0, Cp - C)))  # (1, Cp)

    folded = (E % 128 == 0)   # lane-folded single-matmul reductor needs E % 128 == 0
    xq = x.astype(x_dtype)    # bf16 streaming of x; f32 accumulation in-kernel
    if folded:
        # (B, P, E) -> (P, B*E), column index = b*E + e, padded to Bp samples.
        xk = jnp.transpose(xq, (1, 0, 2)).reshape(P, B * E)
        xk = jnp.pad(xk, ((0, 0), (0, (Bp - B) * E)))
        x_spec = pl.BlockSpec((P, tb * E), lambda i: (0, i))
        kernel = cls_head_folded_kernel
    else:
        xk = jnp.pad(xq, ((0, Bp - B), (0, 0), (0, 0)))
        x_spec = pl.BlockSpec((tb, P, E), lambda i: (i, 0, 0))
        kernel = cls_head_loop_kernel

    def full_vmem(arr):       # grid-invariant resident weight (constant index map)
        nd = arr.ndim
        return pl.BlockSpec(arr.shape, lambda i, _nd=nd: (0,) * _nd)

    out = pl.pallas_call(
        kernel,
        out_shape=jax.ShapeDtypeStruct((Bp, Cp), jnp.float32),
        grid=grid,
        in_specs=[
            x_spec,
            full_vmem(w1r),
            full_vmem(b1r),
            full_vmem(w2r),
            pl.BlockSpec(memory_space=pltpu.MemorySpace.SMEM),   # b2r scalar
            full_vmem(gamma),
            full_vmem(beta),
            full_vmem(w1m_t),
            full_vmem(b1m),
            full_vmem(w2m_t),
            full_vmem(b2m),
        ],
        out_specs=pl.BlockSpec((tb, Cp), lambda i: (i, 0)),
        compiler_params=pltpu.CompilerParams(
            dimension_semantics=("parallel",),
            vmem_limit_bytes=32 * 1024 * 1024),
    )(xk, w1r, b1r, w2r, b2r, gamma, beta, w1m_t, b1m, w2m_t, b2m)

    # Padded batch rows push a constant vector through LayerNorm (finite thanks to
    # eps=1e-6) and are sliced off here; padded class lanes are sliced off too.
    return out[:B, :C]


def ref_forward(x, p):
    # pure-JAX reference mirroring the PyTorch module (eval mode)
    xt = jnp.transpose(x, (0, 2, 1))                      # (B, E, P)
    h1 = jax.nn.relu(xt @ p["w1r"].T + p["b1r"])          # (B, E, P//2)
    r = h1 @ p["w2r"].T + p["b2r"]                        # (B, E, 1)
    v = r[..., 0]                                         # (B, E)
    mean = v.mean(-1, keepdims=True)
    var = ((v - mean) ** 2).mean(-1, keepdims=True)
    v = (v - mean) / jnp.sqrt(var + 1e-6) * p["gamma"] + p["beta"]
    h = jax.nn.relu(v @ p["w1m"].T + p["b1m"])
    return h @ p["w2m"].T + p["b2m"]


if __name__ == "__main__":
    # Toy shapes implied by the module: batch=2, number_patches=8,
    # embedding_dim=32, number_of_class=4.  E=32 exercises the fori_loop
    # reductor path on real hardware.
    B, P, E, C = 2, 8, 32, 4
    key = jax.random.PRNGKey(0)
    kx, kp = jax.random.split(key)
    x = jax.random.normal(kx, (B, P, E), jnp.float32)
    params = init_params(kp, P, E, C)

    logits = jax.block_until_ready(cls_head_forward(x, params))

    # The kernel streams x in bf16; give the reference the same rounded input.
    x_stream = x.astype(jnp.bfloat16).astype(jnp.float32)
    expected = ref_forward(x_stream, params)
    assert logits.shape == (B, C), logits.shape
    assert jnp.allclose(logits, expected, atol=1e-3, rtol=1e-3), (
        float(jnp.max(jnp.abs(logits - expected))))

    # Sanity-check the folded (E % 128 == 0) reductor path's numerics on the
    # CPU emulator (no extra TPU compile risk; realistic-E configs take this path).
    B2, P2, E2, C2 = 4, 8, 128, 4
    k2x, k2p = jax.random.split(jax.random.PRNGKey(1))
    x2 = jax.random.normal(k2x, (B2, P2, E2), jnp.float32)
    params2 = init_params(k2p, P2, E2, C2)
    with pltpu.force_tpu_interpret_mode():
        logits2 = jax.block_until_ready(cls_head_forward(x2, params2))
    expected2 = ref_forward(x2.astype(jnp.bfloat16).astype(jnp.float32), params2)
    assert jnp.allclose(logits2, expected2, atol=1e-3, rtol=1e-3), (
        float(jnp.max(jnp.abs(logits2 - expected2))))

    print("KERNEL_OK")
</pallas_src>

<mosaic_0001>
module attributes {stable_mosaic.version = 11 : i64} {
  func.func @cls_head_loop_kernel(%arg0: i32, %arg1: memref<8x8x32xbf16, #tpu.memory_space<vmem>>, %arg2: memref<4x8xf32, #tpu.memory_space<vmem>>, %arg3: memref<4x1xf32, #tpu.memory_space<vmem>>, %arg4: memref<4x1xf32, #tpu.memory_space<vmem>>, %arg5: memref<1x1xf32, #tpu.memory_space<smem>>, %arg6: memref<1x32xf32, #tpu.memory_space<vmem>>, %arg7: memref<1x32xf32, #tpu.memory_space<vmem>>, %arg8: memref<32x16xf32, #tpu.memory_space<vmem>>, %arg9: memref<1x16xf32, #tpu.memory_space<vmem>>, %arg10: memref<16x128xf32, #tpu.memory_space<vmem>>, %arg11: memref<1x128xf32, #tpu.memory_space<vmem>>, %arg12: memref<8x128xf32, #tpu.memory_space<vmem>>) attributes {dimension_semantics = [#tpu.dimension_semantics<parallel>], iteration_bounds = array<i64: 1>, scalar_prefetch = 0 : i64, scratch_operands = 0 : i64, tpu.core_type = #tpu.core_type<tc>, window_params = [{transform_indices = @transform_0, window_bounds = array<i64: 8, 8, 32>}, {pipeline_mode = #tpu.pipeline_mode<synchronous>, transform_indices = @transform_1, window_bounds = array<i64: 4, 8>}, {pipeline_mode = #tpu.pipeline_mode<synchronous>, transform_indices = @transform_2, window_bounds = array<i64: 4, 1>}, {pipeline_mode = #tpu.pipeline_mode<synchronous>, transform_indices = @transform_3, window_bounds = array<i64: 4, 1>}, {transform_indices = @transform_4, window_bounds = array<i64: 1, 1>}, {pipeline_mode = #tpu.pipeline_mode<synchronous>, transform_indices = @transform_5, window_bounds = array<i64: 1, 32>}, {pipeline_mode = #tpu.pipeline_mode<synchronous>, transform_indices = @transform_6, window_bounds = array<i64: 1, 32>}, {pipeline_mode = #tpu.pipeline_mode<synchronous>, transform_indices = @transform_7, window_bounds = array<i64: 32, 16>}, {pipeline_mode = #tpu.pipeline_mode<synchronous>, transform_indices = @transform_8, window_bounds = array<i64: 1, 16>}, {pipeline_mode = #tpu.pipeline_mode<synchronous>, transform_indices = @transform_9, window_bounds = array<i64: 16, 128>}, {pipeline_mode = #tpu.pipeline_mode<synchronous>, transform_indices = @transform_10, window_bounds = array<i64: 1, 128>}, {transform_indices = @transform_11, window_bounds = array<i64: 8, 128>}]} {
    %c0 = arith.constant 0 : index
    %c0_0 = arith.constant 0 : index
    %0 = vector.load %arg2[%c0, %c0_0] : memref<4x8xf32, #tpu.memory_space<vmem>>, vector<4x8xf32>
    %c0_1 = arith.constant 0 : index
    %c0_2 = arith.constant 0 : index
    %1 = vector.load %arg3[%c0_1, %c0_2] : memref<4x1xf32, #tpu.memory_space<vmem>>, vector<4x1xf32>
    %c0_3 = arith.constant 0 : index
    %c0_4 = arith.constant 0 : index
    %2 = vector.load %arg4[%c0_3, %c0_4] : memref<4x1xf32, #tpu.memory_space<vmem>>, vector<4x1xf32>
    %3 = tpu.iota {dimensions = array<i32: 0>} : vector<8x1xi32>
    %cst = arith.constant 0.000000e+00 : f32
    %4 = vector.broadcast %cst : f32 to vector<8x32xf32>
    %c0_i32 = arith.constant 0 : i32
    %c8_i32 = arith.constant 8 : i32
    %5 = arith.addi %c0_i32, %c8_i32 : i32
    %c1_i32 = arith.constant 1 : i32
    %6 = scf.for %arg13 = %c0_i32 to %5 step %c1_i32 iter_args(%arg14 = %4) -> (vector<8x32xf32>)  : i32 {
      %47 = arith.index_cast %arg13 : i32 to index
      %c0_30 = arith.constant 0 : index
      %c0_31 = arith.constant 0 : index
      %48 = vector.load %arg1[%47, %c0_30, %c0_31] : memref<8x8x32xbf16, #tpu.memory_space<vmem>>, vector<1x8x32xbf16>
      %49 = vector.shape_cast %48 : vector<1x8x32xbf16> to vector<8x32xbf16>
      %50 = arith.extf %49 : vector<8x32xbf16> to vector<8x32xf32>
      %cst_32 = arith.constant dense<0.000000e+00> : vector<4x32xf32>
      %51 = tpu.matmul %0, %50, %cst_32 {dimension_numbers = #tpu.dot_dimension_numbers<[1], [0], [0], [1], [0, 0, 1, 1], [], []>} : vector<4x8xf32>, vector<8x32xf32>, vector<4x32xf32> -> vector<4x32xf32>
      %52 = vector.broadcast %1 : vector<4x1xf32> to vector<4x32xf32>
      %53 = arith.addf %51, %52 : vector<4x32xf32>
      %cst_33 = arith.constant 0.000000e+00 : f32
      %54 = vector.broadcast %cst_33 : f32 to vector<4x32xf32>
      %55 = arith.maximumf %53, %54 : vector<4x32xf32>
      %56 = vector.broadcast %2 : vector<4x1xf32> to vector<4x32xf32>
      %57 = arith.mulf %55, %56 : vector<4x32xf32>
      %cst_34 = arith.constant dense<0.000000e+00> : vector<32xf32>
      %58 = vector.multi_reduction <add>, %57, %cst_34 [0] : vector<4x32xf32> to vector<32xf32>
      %59 = vector.shape_cast %58 : vector<32xf32> to vector<1x32xf32>
      %60 = vector.broadcast %arg13 : i32 to vector<8x1xi32>
      %61 = arith.cmpi eq, %3, %60 : vector<8x1xi32>
      %62 = vector.shape_cast %61 : vector<8x1xi1> to vector<8x1xi1>
      %63 = vector.broadcast %62 : vector<8x1xi1> to vector<8x32xi1>
      %64 = vector.shape_cast %59 : vector<1x32xf32> to vector<1x32xf32>
      %65 = vector.broadcast %64 : vector<1x32xf32> to vector<8x32xf32>
      %66 = arith.select %63, %65, %arg14 : vector<8x32xi1>, vector<8x32xf32>
      scf.yield %66 : vector<8x32xf32>
    }
    %c8_i32_5 = arith.constant 8 : i32
    %c0_6 = arith.constant 0 : index
    %c0_7 = arith.constant 0 : index
    %7 = memref.load %arg5[%c0_6, %c0_7] : memref<1x1xf32, #tpu.memory_space<smem>>
    %8 = vector.broadcast %7 : f32 to vector<8x32xf32>
    %9 = arith.addf %6, %8 : vector<8x32xf32>
    %cst_8 = arith.constant dense<0.000000e+00> : vector<8xf32>
    %10 = vector.multi_reduction <add>, %9, %cst_8 [1] : vector<8x32xf32> to vector<8xf32>
    %11 = vector.shape_cast %10 : vector<8xf32> to vector<8x1xf32>
    %cst_9 = arith.constant 3.200000e+01 : f32
    %12 = vector.broadcast %cst_9 : f32 to vector<8x1xf32>
    %13 = arith.divf %11, %12 : vector<8x1xf32>
    %14 = vector.broadcast %13 : vector<8x1xf32> to vector<8x32xf32>
    %15 = arith.subf %9, %14 : vector<8x32xf32>
    %16 = arith.mulf %15, %15 : vector<8x32xf32>
    %cst_10 = arith.constant dense<0.000000e+00> : vector<8xf32>
    %17 = vector.multi_reduction <add>, %16, %cst_10 [1] : vector<8x32xf32> to vector<8xf32>
    %18 = vector.shape_cast %17 : vector<8xf32> to vector<8x1xf32>
    %cst_11 = arith.constant 3.200000e+01 : f32
    %19 = vector.broadcast %cst_11 : f32 to vector<8x1xf32>
    %20 = arith.divf %18, %19 : vector<8x1xf32>
    %21 = vector.broadcast %13 : vector<8x1xf32> to vector<8x32xf32>
    %22 = arith.subf %9, %21 : vector<8x32xf32>
    %cst_12 = arith.constant 9.99999997E-7 : f32
    %23 = vector.broadcast %cst_12 : f32 to vector<8x1xf32>
    %24 = arith.addf %20, %23 : vector<8x1xf32>
    %25 = math.rsqrt %24 : vector<8x1xf32>
    %26 = vector.broadcast %25 : vector<8x1xf32> to vector<8x32xf32>
    %27 = arith.mulf %22, %26 : vector<8x32xf32>
    %c0_13 = arith.constant 0 : index
    %c0_14 = arith.constant 0 : index
    %28 = vector.load %arg6[%c0_13, %c0_14] : memref<1x32xf32, #tpu.memory_space<vmem>>, vector<1x32xf32>
    %29 = vector.broadcast %28 : vector<1x32xf32> to vector<8x32xf32>
    %30 = arith.mulf %27, %29 : vector<8x32xf32>
    %c0_15 = arith.constant 0 : index
    %c0_16 = arith.constant 0 : index
    %31 = vector.load %arg7[%c0_15, %c0_16] : memref<1x32xf32, #tpu.memory_space<vmem>>, vector<1x32xf32>
    %32 = vector.broadcast %31 : vector<1x32xf32> to vector<8x32xf32>
    %33 = arith.addf %30, %32 : vector<8x32xf32>
    %c0_17 = arith.constant 0 : index
    %c0_18 = arith.constant 0 : index
    %34 = vector.load %arg8[%c0_17, %c0_18] : memref<32x16xf32, #tpu.memory_space<vmem>>, vector<32x16xf32>
    %cst_19 = arith.constant dense<0.000000e+00> : vector<8x16xf32>
    %35 = tpu.matmul %33, %34, %cst_19 {dimension_numbers = #tpu.dot_dimension_numbers<[1], [0], [0], [1], [0, 0, 1, 1], [], []>} : vector<8x32xf32>, vector<32x16xf32>, vector<8x16xf32> -> vector<8x16xf32>
    %c0_20 = arith.constant 0 : index
    %c0_21 = arith.constant 0 : index
    %36 = vector.load %arg9[%c0_20, %c0_21] : memref<1x16xf32, #tpu.memory_space<vmem>>, vector<1x16xf32>
    %37 = vector.broadcast %36 : vector<1x16xf32> to vector<8x16xf32>
    %38 = arith.addf %35, %37 : vector<8x16xf32>
    %cst_22 = arith.constant 0.000000e+00 : f32
    %39 = vector.broadcast %cst_22 : f32 to vector<8x16xf32>
    %40 = arith.maximumf %38, %39 : vector<8x16xf32>
    %c0_23 = arith.constant 0 : index
    %c0_24 = arith.constant 0 : index
    %41 = vector.load %arg10[%c0_23, %c0_24] : memref<16x128xf32, #tpu.memory_space<vmem>>, vector<16x128xf32>
    %cst_25 = arith.constant dense<0.000000e+00> : vector<8x128xf32>
    %42 = tpu.matmul %40, %41, %cst_25 {dimension_numbers = #tpu.dot_dimension_numbers<[1], [0], [0], [1], [0, 0, 1, 1], [], []>} : vector<8x16xf32>, vector<16x128xf32>, vector<8x128xf32> -> vector<8x128xf32>
    %c0_26 = arith.constant 0 : index
    %c0_27 = arith.constant 0 : index
    %43 = vector.load %arg11[%c0_26, %c0_27] : memref<1x128xf32, #tpu.memory_space<vmem>>, vector<1x128xf32>
    %44 = vector.broadcast %43 : vector<1x128xf32> to vector<8x128xf32>
    %45 = arith.addf %42, %44 : vector<8x128xf32>
    %c0_28 = arith.constant 0 : index
    %c0_29 = arith.constant 0 : index
    %46 = vector.load %arg12[%c0_28, %c0_29] : memref<8x128xf32, #tpu.memory_space<vmem>>, vector<8x128xf32>
    tpu.vector_store %arg12[%c0_28, %c0_29], %45 {strides = array<i32>} : memref<8x128xf32, #tpu.memory_space<vmem>>, vector<8x128xf32>,
    return
  }
  func.func @transform_0(%arg0: i32) -> (i32, i32, i32) {
    %c0_i32 = arith.constant 0 : i32
    %c0_i32_0 = arith.constant 0 : i32
    %c0_i32_1 = arith.constant 0 : i32
    return %arg0, %c0_i32, %c0_i32_0 : i32, i32, i32
  }
  func.func @transform_1(%arg0: i32) -> (i32, i32) {
    %c0_i32 = arith.constant 0 : i32
    %c0_i32_0 = arith.constant 0 : i32
    %c0_i32_1 = arith.constant 0 : i32
    return %c0_i32, %c0_i32_0 : i32, i32
  }
  func.func @transform_2(%arg0: i32) -> (i32, i32) {
    %c0_i32 = arith.constant 0 : i32
    %c0_i32_0 = arith.constant 0 : i32
    %c0_i32_1 = arith.constant 0 : i32
    return %c0_i32, %c0_i32_0 : i32, i32
  }
  func.func @transform_3(%arg0: i32) -> (i32, i32) {
    %c0_i32 = arith.constant 0 : i32
    %c0_i32_0 = arith.constant 0 : i32
    %c0_i32_1 = arith.constant 0 : i32
    return %c0_i32, %c0_i32_0 : i32, i32
  }
  func.func @transform_4(%arg0: i32) -> (i32, i32) {
    %c0_i32 = arith.constant 0 : i32
    %c0_i32_0 = arith.constant 0 : i32
    %c0_i32_1 = arith.constant 0 : i32
    return %c0_i32, %c0_i32_0 : i32, i32
  }
  func.func @transform_5(%arg0: i32) -> (i32, i32) {
    %c0_i32 = arith.constant 0 : i32
    %c0_i32_0 = arith.constant 0 : i32
    %c0_i32_1 = arith.constant 0 : i32
    return %c0_i32, %c0_i32_0 : i32, i32
  }
  func.func @transform_6(%arg0: i32) -> (i32, i32) {
    %c0_i32 = arith.constant 0 : i32
    %c0_i32_0 = arith.constant 0 : i32
    %c0_i32_1 = arith.constant 0 : i32
    return %c0_i32, %c0_i32_0 : i32, i32
  }
  func.func @transform_7(%arg0: i32) -> (i32, i32) {
    %c0_i32 = arith.constant 0 : i32
    %c0_i32_0 = arith.constant 0 : i32
    %c0_i32_1 = arith.constant 0 : i32
    return %c0_i32, %c0_i32_0 : i32, i32
  }
  func.func @transform_8(%arg0: i32) -> (i32, i32) {
    %c0_i32 = arith.constant 0 : i32
    %c0_i32_0 = arith.constant 0 : i32
    %c0_i32_1 = arith.constant 0 : i32
    return %c0_i32, %c0_i32_0 : i32, i32
  }
  func.func @transform_9(%arg0: i32) -> (i32, i32) {
    %c0_i32 = arith.constant 0 : i32
    %c0_i32_0 = arith.constant 0 : i32
    %c0_i32_1 = arith.constant 0 : i32
    return %c0_i32, %c0_i32_0 : i32, i32
  }
  func.func @transform_10(%arg0: i32) -> (i32, i32) {
    %c0_i32 = arith.constant 0 : i32
    %c0_i32_0 = arith.constant 0 : i32
    %c0_i32_1 = arith.constant 0 : i32
    return %c0_i32, %c0_i32_0 : i32, i32
  }
  func.func @transform_11(%arg0: i32) -> (i32, i32) {
    %c0_i32 = arith.constant 0 : i32
    %c0_i32_0 = arith.constant 0 : i32
    return %arg0, %c0_i32 : i32, i32
  }
}

</mosaic_0001>

<bundles_post_ra>
// kernel: tpu_custom_call.1
= control target key start
LH: loop header
LB: loop body
LE: loop exit
PB: predicated region body
PF: predicated region fallthrough
CT: control target
= control target key end

     0   :  { %s650_s0 = inlined_call_operand.vmem [shape: bf16[8,8,32], index: 0, kind: input, shape index: {}]   ;;  %s651_s1 = inlined_call_operand.vmem [shape: f32[4,8], index: 1, kind: input, shape index: {}]   ;;  %s652_s2 = inlined_call_operand.vmem [shape: f32[4,1], index: 2, kind: input, shape index: {}]   ;;  %s653_s3 = inlined_call_operand.vmem [shape: f32[4,1], index: 3, kind: input, shape index: {}]   ;;  %s654_s4 = inlined_call_operand.<no memory space> [shape: f32[1,1], index: 4, kind: input, shape index: {}]   ;;  %s655_s5 = inlined_call_operand.vmem [shape: f32[1,32], index: 5, kind: input, shape index: {}]   ;;  %s656_s6 = inlined_call_operand.hbm [shape: f32[1,32], index: 6, kind: input, shape index: {}]   ;;  %s657_s7 = inlined_call_operand.vmem [shape: f32[32,16], index: 7, kind: input, shape index: {}]   ;;  %s658_s8 = inlined_call_operand.vmem [shape: f32[1,16], index: 8, kind: input, shape index: {}]   ;;  %s659_s9 = inlined_call_operand.vmem [shape: f32[16,128], index: 9, kind: input, shape index: {}]   ;;  %s660_s10 = inlined_call_operand.vmem [shape: f32[1,128], index: 10, kind: input, shape index: {}]   ;;  %s661_s11 = inlined_call_operand.hbm [shape: f32[8,128], index: 11, kind: output, shape index: {}]  }
   0x1   :  { %16 = sst [smem:[#allocation2]] %s654_s4 }
   0x2   :  { %17 = vsyncpa [#allocation4], 0 }
   0x3   :  { %18 = vsyncpa [#allocation5], 0  ;;  %s522_s19 = smov [#allocation3]  }
   0x4   :  { %s37_s20 = sshll.u32 %s522_s19, 4  ;;  %s38_s20 = int_to_ptr.vmem [resolvable:$true] %s37_s20 }
   0x5   :  { %s470_s21 = scalar_lea.vmem %s38_s20, 16  ;;  %s474_s22 = scalar_lea.vmem %s38_s20, 32 }
   0x6   :  { %p471_p0 = scmp.ne.s32.totalorder %s38_s20, %s470_s21  ;;  %p475_p1 = scmp.lt.s32.totalorder %s38_s20, %s38_s20 }
   0x7   :  { %p476_p2 = scmp.lt.s32.totalorder %s474_s22, %s470_s21 }
   0x9   :  { %p477_p3 = por %p476_p2, %p475_p1 }
   0xb   :  { %p478_p4 = pnand %p477_p3, %p471_p0 }
   0xd   :  { %481 = shalt.err (!%p478_p4)
}
   0xe   :  { %40 = dma.hbm_to_vmem [thread:$0]  %s656_s6, 16, %s38_s20, [#allocation4]  }
   0xf   :  { %510 = dma.done.wait [#allocation4], 16  }
  0x10   :  { %511 = vsyncadd [#allocation4], 4294967280  ;;  %v55_v0 = vlaneseq  ;;  %v52_v2 = vld [vmem:[%s651_s1] sm:$0xf]  ;;  %v514_v5 = vmov 0.0   ;;  %s604_s30 = smov 0  }
  0x11   :  { %v53_v3 = vld [vmem:[%s652_s2] sm:$0xf] }
  0x12   :  { %v56_v1 = vshrl.u32 %v55_v0, 7  ;;  %v54_v4 = vld [vmem:[%s653_s3] sm:$0xf] }
  0x13 LB: > { %v523_v6 = vmov 0.0   ;;  %vm524_vm0 = vmmov 0   ;;  %s395_s1 = sshll.u32 %s520_s30, 2  ;;  %v525_v7 = vmov 0   ;;  %vm73_vm1 = vcmask 64512   ;;  %s520_s30 = sphi %s604_s30, %s62_s30   ;;  %v516_v5 = vphi %v514_v5, %v515_v5  }
  0x14   : > { %413 = vmatprep.subr.mxu0 %v523_v6  ;;  %415 = vmatprep.mubr.msk.f32.mxu0 %vm524_vm0, %v523_v6  ;;  %s65_s3 = scalar_lea.vmem %s650_s0, %s395_s1  ;;  %vm154_vm2 = vcmask 257024   ;;  %v162_v21 = vstv %s520_s30  ;;  %s62_s30 = sadd.s32 1, %s520_s30  }
  0x15   : > { %459 = vset.pattern.permute.xlu0 %v525_v7  ;;  %v66_v8 = vld [vmem:[%s65_s3] sm:$0xf]  ;;  %vm163_vm3 = vcmp.eq.s32.totalorder %v56_v1, %v162_v21  ;;  %p59_p5 = scmp.ge.s32.totalorder %s62_s30, 8  }
  0x16   : > { %70 = vperm.xlu0 %459, %v53_v3   ;;  %v67_v9 = vunpack.c.l.bf16 %v66_v8  ;;  %s167_s12 = sld [smem:[#allocation2]] (%p59_p5)  ;;  %vm170_vm4 = vcmask (%p59_p5), 261120   ;;  %v204_v34 = vld [vmem:[%s657_s7 + $0x18] sm:$0xff] (%p59_p5)  ;;  %v526_v35 = vmov (%p59_p5), 0.0   ;;  %v203_v36 = vld [vmem:[%s657_s7 + $0x10] sm:$0xff] (%p59_p5)  ;;  %vm527_vm5 = vmmov (%p59_p5), 0  }
  0x17   :  { %429 = vmatprep.subr.mxu1 (%p59_p5), %v526_v35  ;;  %v202_v37 = vld [vmem:[%s657_s7 + $0x8] sm:$0xff] (%p59_p5)  ;;  %433 = vmatprep.mubr.msk.f32.mxu1 (%p59_p5), %vm527_vm5, %v526_v35  ;;  %v201_v38 = vld [vmem:[%s657_s7] sm:$0xff] (%p59_p5)  ;;  %vm295_vm6 = vcmask (%p59_p5), 130048   ;;  %s528_s27 = smov (%p59_p5), [#allocation6]  }
  0x18   : > { %414 = vmatpush3.msra.mxu0 %v67_v9  ;;  %v397_v43 = vld [vmem:[%s655_s5] ss:$0 sm:$0xff] (%p59_p5)  ;;  %v287_v48 = vld [vmem:[%s659_s9 + $0x8] sm:$0xff] (%p59_p5)  ;;  %s376_s28 = sshll.u32 (%p59_p5), %s528_s27, 4  ;;  %s377_s28 = int_to_ptr.vmem [resolvable:$true] %s376_s28 }
  0x19   : > { %416 = vmatmul.mubr.msk.f32.vlgmr.msra.gmra.mxu0 %vm73_vm1, %v52_v2  ;;  %418 = vmatprep.subr.mxu0 (%p59_p5), %v526_v35  ;;  %v398_v45 = vld [vmem:[#allocation3] ss:$0 sm:$0xff] (%p59_p5)  ;;  %p487_p7 = scmp.lt.s32.totalorder (%p59_p5), %s377_s28, %s377_s28 }
  0x1a   : > { %150 = vperm.xlu0 %459, %v54_v4   ;;  %426 = vmatprep.mubr.msk.f32.mxu0 (%p59_p5), %vm527_vm5, %v526_v35  ;;  %v286_v49 = vld [vmem:[%s659_s9] sm:$0xff] (%p59_p5)  ;;  %s482_s9 = scalar_lea.vmem (%p59_p5), %s377_s28, 128 }
  0x1b   :  { %419 = vmatpush3.msra.mxu0 (%p59_p5), %v204_v34  ;;  %430 = vmatpush3.msra.mxu1 (%p59_p5), %v287_v48  ;;  %v399_v50 = vld [vmem:[%s658_s8] ss:$0 sm:$0xff] (%p59_p5)  ;;  %p483_p6 = scmp.ne.s32.totalorder (%p59_p5), %s377_s28, %s482_s9  ;;  %p488_p8 = scmp.lt.s32.totalorder (%p59_p5), %s482_s9, %s482_s9 }
  0x1c   :  { %v168_v26 = vstv (%p59_p5), %s167_s12  ;;  %420 = vmatprep.subr.mxu0 (%p59_p5), %v526_v35  ;;  %431 = vmatprep.subr.mxu1 (%p59_p5), %v526_v35  ;;  %v401_v55 = vld [vmem:[%s660_s10] ss:$0 sm:$0xff] (%p59_p5) }
  0x1d   :  { %421 = vmatpush3.msra.mxu0 (%p59_p5), %v203_v36  ;;  %432 = vmatpush3.msra.mxu1 (%p59_p5), %v286_v49  ;;  %p489_p9 = por (%p59_p5), %p488_p8, %p487_p7 }
  0x1e   :  { %422 = vmatprep.subr.mxu0 (%p59_p5), %v526_v35 }
  0x1f   :  { %423 = vmatpush3.msra.mxu0 (%p59_p5), %v202_v37  ;;  %p490_p10 = pnand (%p59_p5), %p489_p9, %p483_p6 }
  0x20   :  { %424 = vmatprep.subr.mxu0 (%p59_p5), %v526_v35 }
  0x21   :  { %425 = vmatpush3.msra.mxu0 (%p59_p5), %v201_v38 }
  0x91   : > { %v71_v10 = vpop.permute.xlu0 %70 }
  0x95   : > { %v151_v15 = vpop.permute.xlu0 %150 }
  0xd9   : > { %v143_v11 = vpop.f32.mrf.mxu0 }
  0xda   : > { %v144_v12 = vadd.f32 %v143_v11, %v71_v10 }
  0xdb   : > { %v417_v13 = vpop.f32.mrf.mxu0 }
  0xdc   : > { %v147_v14 = vmax.f32 %v144_v12, 0.0 }
  0xde   : > { %v153_v16 = vmul.f32 %v151_v15, %v147_v14 }
  0xe0   : > { %v155_v17 = vsel %vm154_vm2, %v153_v16, 0.0 }
  0xe1   : > { %v156_v18 = vrot.slane %v155_v17, 4 }
  0xe3   : > { %v157_v19 = vadd.f32 %v156_v18, %v155_v17 }
  0xe5   : > { %v158_v20 = vrot.slane %v157_v19, 2 }
  0xe7   : > { %v159_v22 = vadd.f32 %v158_v20, %v157_v19 }
  0xe9   : > { %v160_v23 = vrot.slane %v159_v22, 1 }
  0xea   :  { %61 = sbr.rel (!%p59_p5) target bundleno = 19 (0x13), region = 76 }
  0xeb   : > { %v161_v24 = vadd.f32 %v160_v23, %v159_v22 }
  0xed   : > { %v166_v25 = vsel %vm163_vm3, %v161_v24, %v516_v5  }
  0xee   : > { %v515_v5 = vmov %v166_v25   ;;  %v169_v27 = vadd.f32 (%p59_p5), %v168_v26, %v166_v25 }
  0xf0   :  { %v171_v28 = vsel %vm170_vm4, %v169_v27, 0.0 }
  0xf1   :  { %172 = vadd.xlane.f32.xlu0 %v171_v28 }
 0x17a   :  { %v173_v29 = vpop.xlane.xlu0 %172 }
 0x17b   :  { %v175_v30 = vmul.f32 0.03125, %v173_v29 }
 0x17d   :  { %v176_v31 = vsub.f32 %v169_v27, %v175_v30 }
 0x17f   :  { %v177_v32 = vmul.f32 %v176_v31, %v176_v31 }
 0x181   :  { %v178_v33 = vsel %vm170_vm4, %v177_v32, 0.0 }
 0x182   :  { %179 = vadd.xlane.f32.xlu0 %v178_v33 }
 0x20b   :  { %v180_v39 = vpop.xlane.xlu0 %179 }
 0x20c   :  { %v181_v40 = vmul.f32 0.03125, %v180_v39 }
 0x20e   :  { %v182_v41 = vadd.f32 1e-06, %v181_v40 }
 0x210   :  { %460 = vrsqrt.f32 %v182_v41 }
 0x21d   :  { %v461_v42 = vpop.eup %460 }
 0x21e   :  { %v184_v44 = vmul.f32 %v461_v42, %v176_v31 }
 0x220   :  { %v192_v46 = vmul.f32 %v397_v43, %v184_v44 }
 0x222   :  { %v200_v47 = vadd.f32 %v398_v45, %v192_v46 }
 0x224   :  { %427 = vmatmul.mubr.msk.f32.vlgmr.msra.gmra.mxu0 %vm170_vm4, %v200_v47 }
 0x2e4   :  { %v281_v51 = vpop.f32.mrf.mxu0 }
 0x2e5   :  { %v282_v52 = vadd.f32 %v399_v50, %v281_v51 }
 0x2e6   :  { %v428_v53 = vpop.f32.mrf.mxu0 }
 0x2e7   :  { %v285_v54 = vmax.f32 %v282_v52, 0.0 }
 0x2e9   :  { %434 = vmatmul.mubr.msk.f32.vlgmr.msra.gmra.mxu1 %vm295_vm6, %v285_v54 }
 0x3a9   :  { %v365_v56 = vpop.f32.mrf.mxu1 }
 0x3aa   :  { %v366_v57 = vadd.f32 %v401_v55, %v365_v56 }
 0x3ab   :  { %v435_v58 = vpop.f32.mrf.mxu1 }
 0x3ac   :  { %369 = vst [vmem:[#allocation6] sm:$0xff] %v366_v57 }
 0x3ad   :  { %493 = shalt.err (!%p490_p10)
}
 0x3ae   :  { %379 = dma.vmem_to_hbm [thread:$0]  %s377_s28, 128, %s661_s11, [#allocation5]  }
 0x3af   :  { %512 = dma.done.wait [#allocation5], 128  }
 0x3b0   :  { %513 = vsyncadd [#allocation5], 4294967168 }
 0x3b1   :  { %383 = vsyncpa [#allocation4], 1 }
 0x3b2   :  { %384 = vsyncpa [#allocation5], 1 }

</bundles_post_ra>
